<compile_context>
chip_gen: v7x
topology: tpu7x:2x2x1
jax: 0.10.0
libtpu: 0.0.40
codegen_flags: <defaults>
</compile_context>

<pallas_src>
import jax
import jax.numpy as jnp
from jax import lax
from jax.experimental import pallas as pl
from jax.experimental.pallas import tpu as pltpu


def _round_up(x, m):
    return (x + m - 1) // m * m


# --------------------------------------------------------------------------- #
# Kernel                                                                      #
# --------------------------------------------------------------------------- #
def _axial_attn_kernel(x_ref,    # (1, L, hb, w)   rows; L=c softmax length, w features
                       wt_ref,   # (Npad, w)       fused [Wq;Wk;Wv], BN folded, 8-aligned sections
                       b_ref,    # (Npad, 1)       fused bias (f32)
                       o_ref):   # (1, L, dim, hb) output, final (c, dim, h) layout
    _, L, hb, w = x_ref.shape
    npad = wt_ref.shape[0]
    dim = o_ref.shape[2]
    half_p = (npad - dim) // 2

    # ---- fused qkv projection: one MXU matmul, rows (h) land on the lane axis.
    # (1, L, hb, w) -> (L*hb, w) is a leading-dim merge (hb is a multiple of the
    # f32 sublane tile), i.e. layout-preserving — no cross-sublane relayout.
    xf = x_ref[...].reshape(L * hb, w).astype(wt_ref.dtype)
    # qkvT[o, l*hb + r] = sum_f W[o, f] * x[l, r, f]   ("NT"-form matmul)
    qkvT = lax.dot_general(wt_ref[...], xf,
                           dimension_numbers=(((1,), (1,)), ((), ())),
                           preferred_element_type=jnp.float32)
    qkvT = qkvT + b_ref[...]                                  # (Npad, L*hb) + (Npad, 1)

    # Aligned static slices: feature sections on the sublane axis (8-aligned),
    # lane axis is (position-major, row-minor).  Padded q/k features are zero
    # and contribute nothing to q.k.
    q = [qkvT[0:half_p,                    i * hb:(i + 1) * hb] for i in range(L)]
    k = [qkvT[half_p:2 * half_p,           i * hb:(i + 1) * hb] for i in range(L)]
    v = [qkvT[2 * half_p:2 * half_p + dim, i * hb:(i + 1) * hb] for i in range(L)]

    # ---- attention over the L (channel) axis, rows lane-dense (VPU / EUP) ----
    for i in range(L):
        # s_ij[r] = sum_f q_i[f, r] * k_j[f, r]  -> (1, hb); sublane reduce only.
        s = [jnp.sum(q[i] * k[j], axis=0, keepdims=True) for j in range(L)]
        m = s[0]
        for j in range(1, L):
            m = jnp.maximum(m, s[j])
        e = [jnp.exp(sj - m) for sj in s]
        den = e[0]
        for j in range(1, L):
            den = den + e[j]
        inv = pl.reciprocal(den, approx=True)                 # EUP slot
        acc = (e[0] * inv) * v[0]                             # (1, hb) bcast x (dim, hb)
        for j in range(1, L):
            acc = acc + (e[j] * inv) * v[j]
        o_ref[0, i] = acc.astype(o_ref.dtype)


# --------------------------------------------------------------------------- #
# Block-size selection / pallas_call wrapper                                  #
# --------------------------------------------------------------------------- #
def _choose_h_tiling(h, nt, est_fn, budget, max_hb):
    """Pick (h_pad, hb): hb is either the full (8-padded) h or a multiple of 128."""
    def candidates(hp):
        cs = set()
        if hp <= max_hb:
            cs.add(hp)
        cs.update(d for d in range(128, min(hp, max_hb) + 1, 128) if hp % d == 0)
        return sorted(cs, reverse=True)

    h_pad = _round_up(h, 8)
    fit = [d for d in candidates(h_pad) if est_fn(d) <= budget]
    if not fit:
        # Nothing fits VMEM: pad h to a multiple of 128 so smaller lane-dense
        # blocks exist.
        h_pad = _round_up(h, 128)
        fit = [d for d in candidates(h_pad) if est_fn(d) <= budget] or [128]
    hb = fit[0]
    # Keep >=2 grid steps where possible so both v7x TensorCores get work.
    if nt * (h_pad // hb) < 2:
        smaller = [d for d in fit if h_pad // d >= 2]
        if smaller:
            hb = smaller[0]
    return h_pad, hb


def axial_attention_pallas(x, wt, bias, *, dim, out_dtype=jnp.float32, max_hb=1024):
    """x: (nt, c, h, w);  wt: (Npad, w);  bias: (Npad, 1).  Returns (nt, c, dim, h)."""
    nt, c, h, w = x.shape
    npad = wt.shape[0]
    in_it = jnp.dtype(x.dtype).itemsize
    wt_it = jnp.dtype(wt.dtype).itemsize

    def _sub(n, itemsize):                       # sublane-tile padded extent
        return _round_up(n, 32 // itemsize)

    def _lane(n):
        return _round_up(n, 128)

    def est(hb):
        # Double-buffered in/out/weight blocks + the qkvT intermediate + the
        # q/k/v slices and softmax temporaries (~2x qkvT) + slack.
        in_blk = c * _sub(hb, in_it) * _lane(w) * in_it
        out_blk = c * _sub(dim, 4) * _lane(hb) * 4
        w_blk = _sub(npad, wt_it) * _lane(w) * wt_it + _sub(npad, 4) * _lane(1) * 4
        qkvt = _sub(npad, 4) * _lane(c * hb) * 4
        return 2 * (in_blk + out_blk + w_blk) + 3 * qkvt + (2 << 20)

    try:
        vmem_cap = int(pltpu.get_tpu_info().vmem_capacity_bytes)
    except Exception:                            # query unsupported -> assume v7x-size VMEM
        vmem_cap = 64 << 20
    budget = max(min(int(vmem_cap * 0.7), 48 << 20), 24 << 20)

    h_pad, hb = _choose_h_tiling(h, nt, est, budget, max_hb)
    if h_pad != h:
        # Padded rows attend only over zeros + biases (finite); sliced off below.
        x = jnp.pad(x, ((0, 0), (0, 0), (0, h_pad - h), (0, 0)))

    out = pl.pallas_call(
        _axial_attn_kernel,
        out_shape=jax.ShapeDtypeStruct((nt, c, dim, h_pad), out_dtype),
        grid=(nt, h_pad // hb),
        in_specs=[
            pl.BlockSpec((1, c, hb, w), lambda n, j: (n, 0, j, 0)),
            pl.BlockSpec((npad, w), lambda n, j: (0, 0)),
            pl.BlockSpec((npad, 1), lambda n, j: (0, 0)),
        ],
        out_specs=pl.BlockSpec((1, c, dim, hb), lambda n, j: (n, 0, 0, j)),
        compiler_params=pltpu.CompilerParams(
            dimension_semantics=("parallel", "parallel"),
            vmem_limit_bytes=int(budget)),
    )(x, wt, bias)
    return out if h_pad == h else out[..., :h]


# --------------------------------------------------------------------------- #
# Parameter folding / synthetic init / top-level forward                      #
# --------------------------------------------------------------------------- #
def fold_projection_weights(params, dim, matmul_dtype=jnp.float32):
    """Fold bn_qkv / bn_similarity-scale / bn_output into one fused [Wq;Wk;Wv]."""
    half = dim // 2
    half_p = _round_up(half, 8)                  # 8-aligned sublane section starts
    w_qkv = params['w_qkv']                      # (2*dim, dim): rows = out feat, cols = in (w)
    qs, qb = params['qkv_scale'], params['qkv_shift']
    sim_s = params['sim_scale']                  # bn_similarity scale (shift: softmax no-op)
    os_, ob = params['out_scale'], params['out_shift']

    wq = w_qkv[:half] * (qs[:half] * sim_s)[:, None]
    bq = qb[:half] * sim_s
    wk = w_qkv[half:dim] * qs[half:dim][:, None]
    bk = qb[half:dim]
    # bn_output folds into V because each softmax row sums to 1.
    wv = w_qkv[dim:] * (qs[dim:] * os_)[:, None]
    bv = qb[dim:] * os_ + ob

    def pad_rows(a, n):
        return jnp.pad(a, ((0, n - a.shape[0]),) + ((0, 0),) * (a.ndim - 1))

    wt = jnp.concatenate([pad_rows(wq, half_p), pad_rows(wk, half_p), wv], axis=0)
    bias = jnp.concatenate([pad_rows(bq, half_p), pad_rows(bk, half_p), bv], axis=0)
    return wt.astype(matmul_dtype), bias.astype(jnp.float32)[:, None]


def init_params(key, dim):
    """Deterministic synthetic parameters (matching the module __init__ shapes)."""
    ks = jax.random.split(key, 12)
    # qkv_transform: Conv1d(dim, 2*dim, k=1, bias=False), N(0, sqrt(1/dim)).
    w_qkv = jax.random.normal(ks[0], (2 * dim, dim), jnp.float32) * jnp.sqrt(1.0 / dim)

    def bn(kg, kb, km, kv, n):
        gamma = 1.0 + 0.1 * jax.random.normal(kg, (n,), jnp.float32)
        beta = 0.1 * jax.random.normal(kb, (n,), jnp.float32)
        mean = 0.1 * jax.random.normal(km, (n,), jnp.float32)
        var = 1.0 + 0.5 * jax.random.uniform(kv, (n,), jnp.float32)
        scale = gamma / jnp.sqrt(var + 1e-5)
        shift = beta - mean * scale
        return scale, shift

    qkv_scale, qkv_shift = bn(ks[1], ks[2], ks[3], ks[4], 2 * dim)     # bn_qkv
    sim_scale, sim_shift = bn(ks[5], ks[6], ks[7], ks[8], 1)           # bn_similarity
    out_scale, out_shift = bn(ks[9], ks[10], ks[11],
                              jax.random.fold_in(key, 99), dim)        # bn_output
    return dict(w_qkv=w_qkv,
                qkv_scale=qkv_scale, qkv_shift=qkv_shift,
                sim_scale=sim_scale[0], sim_shift=sim_shift[0],
                out_scale=out_scale, out_shift=out_shift)


def multi_headed_medical_axial_self_attention(key_tensor, params, shape, dim, *,
                                              matmul_dtype=jnp.float32,
                                              out_dtype=jnp.float32):
    """key_tensor: (batch, time2, original_size) with original_size = C*H*W."""
    c, h, w = shape
    b, t, osz = key_tensor.shape
    assert osz == c * h * w
    # The module feeds the width axis into Conv1d(in_channels=dim): W must == dim.
    assert w == dim and dim % 2 == 0
    nt = b * t

    x = key_tensor.reshape(nt, c, h, w)          # free reshape; no transpose / HBM pass
    wt, bias = fold_projection_weights(params, dim, matmul_dtype)
    out = axial_attention_pallas(x, wt, bias, dim=dim, out_dtype=out_dtype)   # (nt, c, dim, h)
    # torch: (NT, C, out_planes, H) -> view(b, t, c, h, w) -> flatten(2): a pure
    # reinterpretation; (nt, c, dim, h) flattens to exactly the same ordering.
    return out.reshape(b, t, c * h * w)


# --------------------------------------------------------------------------- #
# Pure-jnp mirror of the PyTorch forward (inference-mode BN, unfused)         #
# --------------------------------------------------------------------------- #
def reference_forward(key_tensor, params, shape, dim):
    c, h, w = shape
    b, t, _ = key_tensor.shape
    nt = b * t
    half = dim // 2
    x = key_tensor.reshape(nt, c, h, w)
    xp = jnp.transpose(x, (0, 2, 3, 1))
    rows = xp.reshape(nt * h, w, c)
    qkv = jnp.einsum('oi,bil->bol', params['w_qkv'], rows)
    qkv = qkv * params['qkv_scale'][None, :, None] + params['qkv_shift'][None, :, None]
    q, k, v = qkv[:, :half], qkv[:, half:dim], qkv[:, dim:]
    qk = jnp.einsum('bci,bcj->bij', q, k)
    s = qk * params['sim_scale'] + params['sim_shift']
    sm = jax.nn.softmax(s, axis=-1)
    sv = jnp.einsum('bij,bcj->bci', sm, v)
    out = sv * params['out_scale'][None, :, None] + params['out_shift'][None, :, None]
    out = out.reshape(nt, h, dim, c)
    out = jnp.transpose(out, (0, 3, 2, 1))
    return out.reshape(b, t, -1)


if __name__ == "__main__":
    dim = 16
    shape = (4, 8, 16)   # (C, H, W) — W must equal dim for this module
    b, t = 2, 2
    c, h, w = shape

    root = jax.random.PRNGKey(0)
    k_in, k_par = jax.random.split(root)
    key_tensor = jax.random.normal(k_in, (b, t, c * h * w), jnp.float32)
    params = init_params(k_par, dim)

    @jax.jit
    def run_f32(kt, p):
        return multi_headed_medical_axial_self_attention(kt, p, shape, dim)

    out = jax.block_until_ready(run_f32(key_tensor, params))
    ref = reference_forward(key_tensor, params, shape, dim)
    assert out.shape == (b, t, c * h * w)
    # Tolerance covers the approximate EUP reciprocal (~2^-12 relative) used in
    # the softmax normalization; the BN folding itself is exact algebra.
    assert bool(jnp.allclose(out, ref, atol=5e-3, rtol=5e-3)), \
        float(jnp.max(jnp.abs(out - ref)))

    # Production / bf16-streaming configuration: bf16 activations + bf16 MXU
    # operands (f32 accumulation and f32 softmax math).  Loose tolerance —
    # this is a gross-error / lowering sanity check only.
    @jax.jit
    def run_bf16(kt, p):
        return multi_headed_medical_axial_self_attention(
            kt.astype(jnp.bfloat16), p, shape, dim, matmul_dtype=jnp.bfloat16)

    out_bf16 = jax.block_until_ready(run_bf16(key_tensor, params))
    assert out_bf16.shape == (b, t, c * h * w)
    assert bool(jnp.all(jnp.isfinite(out_bf16)))
    assert bool(jnp.allclose(out_bf16, ref, atol=0.5, rtol=0.5))

    print("KERNEL_OK")
</pallas_src>

<mosaic_0001>
module attributes {stable_mosaic.version = 11 : i64} {
  func.func @_axial_attn_kernel(%arg0: i32, %arg1: i32, %arg2: memref<1x4x8x16xf32, #tpu.memory_space<vmem>>, %arg3: memref<32x16xf32, #tpu.memory_space<vmem>>, %arg4: memref<32x1xf32, #tpu.memory_space<vmem>>, %arg5: memref<1x4x16x8xf32, #tpu.memory_space<vmem>>) attributes {dimension_semantics = [#tpu.dimension_semantics<parallel>, #tpu.dimension_semantics<parallel>], iteration_bounds = array<i64: 4, 1>, scalar_prefetch = 0 : i64, scratch_operands = 0 : i64, tpu.core_type = #tpu.core_type<tc>, window_params = [{transform_indices = @transform_0, window_bounds = array<i64: 1, 4, 8, 16>}, {pipeline_mode = #tpu.pipeline_mode<synchronous>, transform_indices = @transform_1, window_bounds = array<i64: 32, 16>}, {pipeline_mode = #tpu.pipeline_mode<synchronous>, transform_indices = @transform_2, window_bounds = array<i64: 32, 1>}, {transform_indices = @transform_3, window_bounds = array<i64: 1, 4, 16, 8>}]} {
    %c0 = arith.constant 0 : index
    %c0_0 = arith.constant 0 : index
    %c0_1 = arith.constant 0 : index
    %c0_2 = arith.constant 0 : index
    %0 = vector.load %arg2[%c0, %c0_0, %c0_1, %c0_2] : memref<1x4x8x16xf32, #tpu.memory_space<vmem>>, vector<1x4x8x16xf32>
    %1 = vector.shape_cast %0 : vector<1x4x8x16xf32> to vector<32x16xf32>
    %c0_3 = arith.constant 0 : index
    %c0_4 = arith.constant 0 : index
    %2 = vector.load %arg3[%c0_3, %c0_4] : memref<32x16xf32, #tpu.memory_space<vmem>>, vector<32x16xf32>
    %cst = arith.constant dense<0.000000e+00> : vector<32x32xf32>
    %3 = tpu.matmul %2, %1, %cst {dimension_numbers = #tpu.dot_dimension_numbers<[1], [1], [0], [0], [0, 0, 1, 0], [], []>} : vector<32x16xf32>, vector<32x16xf32>, vector<32x32xf32> -> vector<32x32xf32>
    %c0_5 = arith.constant 0 : index
    %c0_6 = arith.constant 0 : index
    %4 = vector.load %arg4[%c0_5, %c0_6] : memref<32x1xf32, #tpu.memory_space<vmem>>, vector<32x1xf32>
    %5 = vector.broadcast %4 : vector<32x1xf32> to vector<32x32xf32>
    %6 = arith.addf %3, %5 : vector<32x32xf32>
    %7 = vector.extract_strided_slice %6 {offsets = [0, 0], sizes = [8, 8], strides = [1, 1]} : vector<32x32xf32> to vector<8x8xf32>
    %8 = vector.extract_strided_slice %6 {offsets = [0, 8], sizes = [8, 8], strides = [1, 1]} : vector<32x32xf32> to vector<8x8xf32>
    %9 = vector.extract_strided_slice %6 {offsets = [0, 16], sizes = [8, 8], strides = [1, 1]} : vector<32x32xf32> to vector<8x8xf32>
    %10 = vector.extract_strided_slice %6 {offsets = [0, 24], sizes = [8, 8], strides = [1, 1]} : vector<32x32xf32> to vector<8x8xf32>
    %11 = vector.extract_strided_slice %6 {offsets = [8, 0], sizes = [8, 8], strides = [1, 1]} : vector<32x32xf32> to vector<8x8xf32>
    %12 = vector.extract_strided_slice %6 {offsets = [8, 8], sizes = [8, 8], strides = [1, 1]} : vector<32x32xf32> to vector<8x8xf32>
    %13 = vector.extract_strided_slice %6 {offsets = [8, 16], sizes = [8, 8], strides = [1, 1]} : vector<32x32xf32> to vector<8x8xf32>
    %14 = vector.extract_strided_slice %6 {offsets = [8, 24], sizes = [8, 8], strides = [1, 1]} : vector<32x32xf32> to vector<8x8xf32>
    %15 = vector.extract_strided_slice %6 {offsets = [16, 0], sizes = [16, 8], strides = [1, 1]} : vector<32x32xf32> to vector<16x8xf32>
    %16 = vector.extract_strided_slice %6 {offsets = [16, 8], sizes = [16, 8], strides = [1, 1]} : vector<32x32xf32> to vector<16x8xf32>
    %17 = vector.extract_strided_slice %6 {offsets = [16, 16], sizes = [16, 8], strides = [1, 1]} : vector<32x32xf32> to vector<16x8xf32>
    %18 = vector.extract_strided_slice %6 {offsets = [16, 24], sizes = [16, 8], strides = [1, 1]} : vector<32x32xf32> to vector<16x8xf32>
    %19 = arith.mulf %7, %11 : vector<8x8xf32>
    %cst_7 = arith.constant dense<0.000000e+00> : vector<8xf32>
    %20 = vector.multi_reduction <add>, %19, %cst_7 [0] : vector<8x8xf32> to vector<8xf32>
    %21 = vector.shape_cast %20 : vector<8xf32> to vector<1x8xf32>
    %22 = arith.mulf %7, %12 : vector<8x8xf32>
    %cst_8 = arith.constant dense<0.000000e+00> : vector<8xf32>
    %23 = vector.multi_reduction <add>, %22, %cst_8 [0] : vector<8x8xf32> to vector<8xf32>
    %24 = vector.shape_cast %23 : vector<8xf32> to vector<1x8xf32>
    %25 = arith.mulf %7, %13 : vector<8x8xf32>
    %cst_9 = arith.constant dense<0.000000e+00> : vector<8xf32>
    %26 = vector.multi_reduction <add>, %25, %cst_9 [0] : vector<8x8xf32> to vector<8xf32>
    %27 = vector.shape_cast %26 : vector<8xf32> to vector<1x8xf32>
    %28 = arith.mulf %7, %14 : vector<8x8xf32>
    %cst_10 = arith.constant dense<0.000000e+00> : vector<8xf32>
    %29 = vector.multi_reduction <add>, %28, %cst_10 [0] : vector<8x8xf32> to vector<8xf32>
    %30 = vector.shape_cast %29 : vector<8xf32> to vector<1x8xf32>
    %31 = arith.maximumf %21, %24 : vector<1x8xf32>
    %32 = arith.maximumf %31, %27 : vector<1x8xf32>
    %33 = arith.maximumf %32, %30 : vector<1x8xf32>
    %34 = arith.subf %21, %33 : vector<1x8xf32>
    %35 = math.exp %34 : vector<1x8xf32>
    %36 = arith.subf %24, %33 : vector<1x8xf32>
    %37 = math.exp %36 : vector<1x8xf32>
    %38 = arith.subf %27, %33 : vector<1x8xf32>
    %39 = math.exp %38 : vector<1x8xf32>
    %40 = arith.subf %30, %33 : vector<1x8xf32>
    %41 = math.exp %40 : vector<1x8xf32>
    %42 = arith.addf %35, %37 : vector<1x8xf32>
    %43 = arith.addf %42, %39 : vector<1x8xf32>
    %44 = arith.addf %43, %41 : vector<1x8xf32>
    %45 = tpu.reciprocal %44 {approx = true} : vector<1x8xf32> -> vector<1x8xf32>
    %46 = arith.mulf %35, %45 : vector<1x8xf32>
    %47 = vector.broadcast %46 : vector<1x8xf32> to vector<16x8xf32>
    %48 = arith.mulf %47, %15 : vector<16x8xf32>
    %49 = arith.mulf %37, %45 : vector<1x8xf32>
    %50 = vector.broadcast %49 : vector<1x8xf32> to vector<16x8xf32>
    %51 = arith.mulf %50, %16 : vector<16x8xf32>
    %52 = arith.addf %48, %51 : vector<16x8xf32>
    %53 = arith.mulf %39, %45 : vector<1x8xf32>
    %54 = vector.broadcast %53 : vector<1x8xf32> to vector<16x8xf32>
    %55 = arith.mulf %54, %17 : vector<16x8xf32>
    %56 = arith.addf %52, %55 : vector<16x8xf32>
    %57 = arith.mulf %41, %45 : vector<1x8xf32>
    %58 = vector.broadcast %57 : vector<1x8xf32> to vector<16x8xf32>
    %59 = arith.mulf %58, %18 : vector<16x8xf32>
    %60 = arith.addf %56, %59 : vector<16x8xf32>
    %c0_11 = arith.constant 0 : index
    %c0_12 = arith.constant 0 : index
    %c0_13 = arith.constant 0 : index
    %c0_14 = arith.constant 0 : index
    %61 = vector.load %arg5[%c0_11, %c0_12, %c0_13, %c0_14] : memref<1x4x16x8xf32, #tpu.memory_space<vmem>>, vector<1x1x16x8xf32>
    %62 = vector.shape_cast %61 : vector<1x1x16x8xf32> to vector<16x8xf32>
    %63 = vector.shape_cast %60 : vector<16x8xf32> to vector<1x1x16x8xf32>
    tpu.vector_store %arg5[%c0_11, %c0_12, %c0_13, %c0_14], %63 {strides = array<i32>} : memref<1x4x16x8xf32, #tpu.memory_space<vmem>>, vector<1x1x16x8xf32>,
    %64 = arith.mulf %8, %11 : vector<8x8xf32>
    %cst_15 = arith.constant dense<0.000000e+00> : vector<8xf32>
    %65 = vector.multi_reduction <add>, %64, %cst_15 [0] : vector<8x8xf32> to vector<8xf32>
    %66 = vector.shape_cast %65 : vector<8xf32> to vector<1x8xf32>
    %67 = arith.mulf %8, %12 : vector<8x8xf32>
    %cst_16 = arith.constant dense<0.000000e+00> : vector<8xf32>
    %68 = vector.multi_reduction <add>, %67, %cst_16 [0] : vector<8x8xf32> to vector<8xf32>
    %69 = vector.shape_cast %68 : vector<8xf32> to vector<1x8xf32>
    %70 = arith.mulf %8, %13 : vector<8x8xf32>
    %cst_17 = arith.constant dense<0.000000e+00> : vector<8xf32>
    %71 = vector.multi_reduction <add>, %70, %cst_17 [0] : vector<8x8xf32> to vector<8xf32>
    %72 = vector.shape_cast %71 : vector<8xf32> to vector<1x8xf32>
    %73 = arith.mulf %8, %14 : vector<8x8xf32>
    %cst_18 = arith.constant dense<0.000000e+00> : vector<8xf32>
    %74 = vector.multi_reduction <add>, %73, %cst_18 [0] : vector<8x8xf32> to vector<8xf32>
    %75 = vector.shape_cast %74 : vector<8xf32> to vector<1x8xf32>
    %76 = arith.maximumf %66, %69 : vector<1x8xf32>
    %77 = arith.maximumf %76, %72 : vector<1x8xf32>
    %78 = arith.maximumf %77, %75 : vector<1x8xf32>
    %79 = arith.subf %66, %78 : vector<1x8xf32>
    %80 = math.exp %79 : vector<1x8xf32>
    %81 = arith.subf %69, %78 : vector<1x8xf32>
    %82 = math.exp %81 : vector<1x8xf32>
    %83 = arith.subf %72, %78 : vector<1x8xf32>
    %84 = math.exp %83 : vector<1x8xf32>
    %85 = arith.subf %75, %78 : vector<1x8xf32>
    %86 = math.exp %85 : vector<1x8xf32>
    %87 = arith.addf %80, %82 : vector<1x8xf32>
    %88 = arith.addf %87, %84 : vector<1x8xf32>
    %89 = arith.addf %88, %86 : vector<1x8xf32>
    %90 = tpu.reciprocal %89 {approx = true} : vector<1x8xf32> -> vector<1x8xf32>
    %91 = arith.mulf %80, %90 : vector<1x8xf32>
    %92 = vector.broadcast %91 : vector<1x8xf32> to vector<16x8xf32>
    %93 = arith.mulf %92, %15 : vector<16x8xf32>
    %94 = arith.mulf %82, %90 : vector<1x8xf32>
    %95 = vector.broadcast %94 : vector<1x8xf32> to vector<16x8xf32>
    %96 = arith.mulf %95, %16 : vector<16x8xf32>
    %97 = arith.addf %93, %96 : vector<16x8xf32>
    %98 = arith.mulf %84, %90 : vector<1x8xf32>
    %99 = vector.broadcast %98 : vector<1x8xf32> to vector<16x8xf32>
    %100 = arith.mulf %99, %17 : vector<16x8xf32>
    %101 = arith.addf %97, %100 : vector<16x8xf32>
    %102 = arith.mulf %86, %90 : vector<1x8xf32>
    %103 = vector.broadcast %102 : vector<1x8xf32> to vector<16x8xf32>
    %104 = arith.mulf %103, %18 : vector<16x8xf32>
    %105 = arith.addf %101, %104 : vector<16x8xf32>
    %c0_19 = arith.constant 0 : index
    %c1 = arith.constant 1 : index
    %c0_20 = arith.constant 0 : index
    %c0_21 = arith.constant 0 : index
    %106 = vector.load %arg5[%c0_19, %c1, %c0_20, %c0_21] : memref<1x4x16x8xf32, #tpu.memory_space<vmem>>, vector<1x1x16x8xf32>
    %107 = vector.shape_cast %106 : vector<1x1x16x8xf32> to vector<16x8xf32>
    %108 = vector.shape_cast %105 : vector<16x8xf32> to vector<1x1x16x8xf32>
    tpu.vector_store %arg5[%c0_19, %c1, %c0_20, %c0_21], %108 {strides = array<i32>} : memref<1x4x16x8xf32, #tpu.memory_space<vmem>>, vector<1x1x16x8xf32>,
    %109 = arith.mulf %9, %11 : vector<8x8xf32>
    %cst_22 = arith.constant dense<0.000000e+00> : vector<8xf32>
    %110 = vector.multi_reduction <add>, %109, %cst_22 [0] : vector<8x8xf32> to vector<8xf32>
    %111 = vector.shape_cast %110 : vector<8xf32> to vector<1x8xf32>
    %112 = arith.mulf %9, %12 : vector<8x8xf32>
    %cst_23 = arith.constant dense<0.000000e+00> : vector<8xf32>
    %113 = vector.multi_reduction <add>, %112, %cst_23 [0] : vector<8x8xf32> to vector<8xf32>
    %114 = vector.shape_cast %113 : vector<8xf32> to vector<1x8xf32>
    %115 = arith.mulf %9, %13 : vector<8x8xf32>
    %cst_24 = arith.constant dense<0.000000e+00> : vector<8xf32>
    %116 = vector.multi_reduction <add>, %115, %cst_24 [0] : vector<8x8xf32> to vector<8xf32>
    %117 = vector.shape_cast %116 : vector<8xf32> to vector<1x8xf32>
    %118 = arith.mulf %9, %14 : vector<8x8xf32>
    %cst_25 = arith.constant dense<0.000000e+00> : vector<8xf32>
    %119 = vector.multi_reduction <add>, %118, %cst_25 [0] : vector<8x8xf32> to vector<8xf32>
    %120 = vector.shape_cast %119 : vector<8xf32> to vector<1x8xf32>
    %121 = arith.maximumf %111, %114 : vector<1x8xf32>
    %122 = arith.maximumf %121, %117 : vector<1x8xf32>
    %123 = arith.maximumf %122, %120 : vector<1x8xf32>
    %124 = arith.subf %111, %123 : vector<1x8xf32>
    %125 = math.exp %124 : vector<1x8xf32>
    %126 = arith.subf %114, %123 : vector<1x8xf32>
    %127 = math.exp %126 : vector<1x8xf32>
    %128 = arith.subf %117, %123 : vector<1x8xf32>
    %129 = math.exp %128 : vector<1x8xf32>
    %130 = arith.subf %120, %123 : vector<1x8xf32>
    %131 = math.exp %130 : vector<1x8xf32>
    %132 = arith.addf %125, %127 : vector<1x8xf32>
    %133 = arith.addf %132, %129 : vector<1x8xf32>
    %134 = arith.addf %133, %131 : vector<1x8xf32>
    %135 = tpu.reciprocal %134 {approx = true} : vector<1x8xf32> -> vector<1x8xf32>
    %136 = arith.mulf %125, %135 : vector<1x8xf32>
    %137 = vector.broadcast %136 : vector<1x8xf32> to vector<16x8xf32>
    %138 = arith.mulf %137, %15 : vector<16x8xf32>
    %139 = arith.mulf %127, %135 : vector<1x8xf32>
    %140 = vector.broadcast %139 : vector<1x8xf32> to vector<16x8xf32>
    %141 = arith.mulf %140, %16 : vector<16x8xf32>
    %142 = arith.addf %138, %141 : vector<16x8xf32>
    %143 = arith.mulf %129, %135 : vector<1x8xf32>
    %144 = vector.broadcast %143 : vector<1x8xf32> to vector<16x8xf32>
    %145 = arith.mulf %144, %17 : vector<16x8xf32>
    %146 = arith.addf %142, %145 : vector<16x8xf32>
    %147 = arith.mulf %131, %135 : vector<1x8xf32>
    %148 = vector.broadcast %147 : vector<1x8xf32> to vector<16x8xf32>
    %149 = arith.mulf %148, %18 : vector<16x8xf32>
    %150 = arith.addf %146, %149 : vector<16x8xf32>
    %c0_26 = arith.constant 0 : index
    %c2 = arith.constant 2 : index
    %c0_27 = arith.constant 0 : index
    %c0_28 = arith.constant 0 : index
    %151 = vector.load %arg5[%c0_26, %c2, %c0_27, %c0_28] : memref<1x4x16x8xf32, #tpu.memory_space<vmem>>, vector<1x1x16x8xf32>
    %152 = vector.shape_cast %151 : vector<1x1x16x8xf32> to vector<16x8xf32>
    %153 = vector.shape_cast %150 : vector<16x8xf32> to vector<1x1x16x8xf32>
    tpu.vector_store %arg5[%c0_26, %c2, %c0_27, %c0_28], %153 {strides = array<i32>} : memref<1x4x16x8xf32, #tpu.memory_space<vmem>>, vector<1x1x16x8xf32>,
    %154 = arith.mulf %10, %11 : vector<8x8xf32>
    %cst_29 = arith.constant dense<0.000000e+00> : vector<8xf32>
    %155 = vector.multi_reduction <add>, %154, %cst_29 [0] : vector<8x8xf32> to vector<8xf32>
    %156 = vector.shape_cast %155 : vector<8xf32> to vector<1x8xf32>
    %157 = arith.mulf %10, %12 : vector<8x8xf32>
    %cst_30 = arith.constant dense<0.000000e+00> : vector<8xf32>
    %158 = vector.multi_reduction <add>, %157, %cst_30 [0] : vector<8x8xf32> to vector<8xf32>
    %159 = vector.shape_cast %158 : vector<8xf32> to vector<1x8xf32>
    %160 = arith.mulf %10, %13 : vector<8x8xf32>
    %cst_31 = arith.constant dense<0.000000e+00> : vector<8xf32>
    %161 = vector.multi_reduction <add>, %160, %cst_31 [0] : vector<8x8xf32> to vector<8xf32>
    %162 = vector.shape_cast %161 : vector<8xf32> to vector<1x8xf32>
    %163 = arith.mulf %10, %14 : vector<8x8xf32>
    %cst_32 = arith.constant dense<0.000000e+00> : vector<8xf32>
    %164 = vector.multi_reduction <add>, %163, %cst_32 [0] : vector<8x8xf32> to vector<8xf32>
    %165 = vector.shape_cast %164 : vector<8xf32> to vector<1x8xf32>
    %166 = arith.maximumf %156, %159 : vector<1x8xf32>
    %167 = arith.maximumf %166, %162 : vector<1x8xf32>
    %168 = arith.maximumf %167, %165 : vector<1x8xf32>
    %169 = arith.subf %156, %168 : vector<1x8xf32>
    %170 = math.exp %169 : vector<1x8xf32>
    %171 = arith.subf %159, %168 : vector<1x8xf32>
    %172 = math.exp %171 : vector<1x8xf32>
    %173 = arith.subf %162, %168 : vector<1x8xf32>
    %174 = math.exp %173 : vector<1x8xf32>
    %175 = arith.subf %165, %168 : vector<1x8xf32>
    %176 = math.exp %175 : vector<1x8xf32>
    %177 = arith.addf %170, %172 : vector<1x8xf32>
    %178 = arith.addf %177, %174 : vector<1x8xf32>
    %179 = arith.addf %178, %176 : vector<1x8xf32>
    %180 = tpu.reciprocal %179 {approx = true} : vector<1x8xf32> -> vector<1x8xf32>
    %181 = arith.mulf %170, %180 : vector<1x8xf32>
    %182 = vector.broadcast %181 : vector<1x8xf32> to vector<16x8xf32>
    %183 = arith.mulf %182, %15 : vector<16x8xf32>
    %184 = arith.mulf %172, %180 : vector<1x8xf32>
    %185 = vector.broadcast %184 : vector<1x8xf32> to vector<16x8xf32>
    %186 = arith.mulf %185, %16 : vector<16x8xf32>
    %187 = arith.addf %183, %186 : vector<16x8xf32>
    %188 = arith.mulf %174, %180 : vector<1x8xf32>
    %189 = vector.broadcast %188 : vector<1x8xf32> to vector<16x8xf32>
    %190 = arith.mulf %189, %17 : vector<16x8xf32>
    %191 = arith.addf %187, %190 : vector<16x8xf32>
    %192 = arith.mulf %176, %180 : vector<1x8xf32>
    %193 = vector.broadcast %192 : vector<1x8xf32> to vector<16x8xf32>
    %194 = arith.mulf %193, %18 : vector<16x8xf32>
    %195 = arith.addf %191, %194 : vector<16x8xf32>
    %c0_33 = arith.constant 0 : index
    %c3 = arith.constant 3 : index
    %c0_34 = arith.constant 0 : index
    %c0_35 = arith.constant 0 : index
    %196 = vector.load %arg5[%c0_33, %c3, %c0_34, %c0_35] : memref<1x4x16x8xf32, #tpu.memory_space<vmem>>, vector<1x1x16x8xf32>
    %197 = vector.shape_cast %196 : vector<1x1x16x8xf32> to vector<16x8xf32>
    %198 = vector.shape_cast %195 : vector<16x8xf32> to vector<1x1x16x8xf32>
    tpu.vector_store %arg5[%c0_33, %c3, %c0_34, %c0_35], %198 {strides = array<i32>} : memref<1x4x16x8xf32, #tpu.memory_space<vmem>>, vector<1x1x16x8xf32>,
    return
  }
  func.func @transform_0(%arg0: i32, %arg1: i32) -> (i32, i32, i32, i32) {
    %c0_i32 = arith.constant 0 : i32
    %c0_i32_0 = arith.constant 0 : i32
    %c0_i32_1 = arith.constant 0 : i32
    return %arg0, %c0_i32, %arg1, %c0_i32_0 : i32, i32, i32, i32
  }
  func.func @transform_1(%arg0: i32, %arg1: i32) -> (i32, i32) {
    %c0_i32 = arith.constant 0 : i32
    %c0_i32_0 = arith.constant 0 : i32
    %c0_i32_1 = arith.constant 0 : i32
    return %c0_i32, %c0_i32_0 : i32, i32
  }
  func.func @transform_2(%arg0: i32, %arg1: i32) -> (i32, i32) {
    %c0_i32 = arith.constant 0 : i32
    %c0_i32_0 = arith.constant 0 : i32
    %c0_i32_1 = arith.constant 0 : i32
    return %c0_i32, %c0_i32_0 : i32, i32
  }
  func.func @transform_3(%arg0: i32, %arg1: i32) -> (i32, i32, i32, i32) {
    %c0_i32 = arith.constant 0 : i32
    %c0_i32_0 = arith.constant 0 : i32
    %c0_i32_1 = arith.constant 0 : i32
    return %arg0, %c0_i32, %c0_i32_0, %arg1 : i32, i32, i32, i32
  }
}

</mosaic_0001>

<bundles_post_ra>
// kernel: run_f32.1
= control target key start
LH: loop header
LB: loop body
LE: loop exit
PB: predicated region body
PF: predicated region fallthrough
CT: control target
= control target key end

     0   :  { %s979_s12 = smov 0   ;;  %s981_s13 = smov 0   ;;  %s1194_s0 = inlined_call_operand.vmem [shape: f32[4,4,8,16], index: 0, kind: input, shape index: {}]   ;;  %s1195_s1 = inlined_call_operand.vmem [shape: f32[32,16], index: 1, kind: input, shape index: {}]   ;;  %s1196_s2 = inlined_call_operand.vmem [shape: f32[32,1], index: 2, kind: input, shape index: {}]   ;;  %s1197_s3 = inlined_call_operand.vmem [shape: f32[4,4,16,8], index: 3, kind: output, shape index: {}]  }
   0x1   :  { %s983_s14 = smov 0  }
   0x2 LB: > { %s25_s15 = sadd.s32 1, %s946_s13  ;;  %p794_p0 = scmp.ge.s32.totalorder %s950_s14, 1  ;;  %s950_s14 = sphi %s983_s14, %s13_s14   ;;  %s946_s13 = sphi %s981_s13, %s1201_s13   ;;  %s942_s12 = sphi %s979_s12, %s1200_s12  }
   0x3   : > { %p27_p1 = scmp.ge.s32.totalorder %s25_s15, 4  ;;  %p156_p2 = scmp.lt.s32.totalorder %s950_s14, 5 }
   0x5   : > { %s1203_s15 = smov (%p27_p1, %s25_s15), 0  ;;  %p157_p3 = pnand %p794_p0, %p156_p2 }
   0x6   : > { %p186_p4 = scmp.lt.s32.totalorder (!%p157_p3), %s942_s12, 3  ;;  %vm234_vm0 = vcmask (!%p157_p3), 130048   ;;  %v206_v0 = vld [vmem:[%s1195_s1] sm:$0xff] (!%p157_p3)  ;;  %v208_v1 = vld [vmem:[%s1195_s1 + $0x10] sm:$0xff] (!%p157_p3)  ;;  %v211_v2 = vld [vmem:[%s1196_s2 + $0x8] sm:$0xff] (!%p157_p3)  ;;  %v952_v3 = vmov (!%p157_p3), 0  }
   0x7   : > { %160 = sbr.rel (%p157_p3) target bundleno = 570 (0x23a), region = 32  ;;  %833 = vmatprep.mubr.msk.f32.mxu0 (!%p157_p3), %vm234_vm0, %v206_v0  ;;  %836 = vmatprep.mubr.msk.f32.mxu1 (!%p157_p3), %vm234_vm0, %v208_v1  ;;  %v213_v4 = vld [vmem:[%s1196_s2 + $0x18] sm:$0xff] (!%p157_p3)  ;;  %v212_v5 = vld [vmem:[%s1196_s2 + $0x10] sm:$0xff] (!%p157_p3)  ;;  %v210_v6 = vld [vmem:[%s1196_s2] sm:$0xff] (!%p157_p3)  ;;  %s953_s9 = smov (!%p157_p3), 16   ;;  %vm537_vm2 = vcmask (!%p157_p3), 195712  }
   0x8   : > { %886 = vset.pattern.permute.xlu0 (!%p157_p3), %v952_v3  ;;  %887 = vset.pattern.permute.xlu1 (!%p157_p3), %v952_v3  ;;  %vm1025_vm1 = vmpackc.low (!%p157_p3), %vm234_vm0, %vm234_vm0  ;;  %v207_v14 = vld [vmem:[%s1195_s1 + $0x8] sm:$0xff] (!%p157_p3)  ;;  %v209_v15 = vld [vmem:[%s1195_s1 + $0x18] sm:$0xff] (!%p157_p3)  ;;  %s954_s10 = smov (!%p157_p3), 8   ;;  %s955_s11 = smov (!%p157_p3), 120   ;;  %vm450_vm3 = vcmask (!%p157_p3), 130112   ;;  %vm345_vm4 = vcmask (!%p157_p3), 64512  }
   0x9   : > { %221 = vperm.xlu0 (!%p157_p3), %886, %v211_v2   ;;  %231 = vperm.xlu1 (!%p157_p3), %887, %v213_v4   ;;  %s956_s16 = smov (!%p157_p3), 24   ;;  %s957_s17 = smov (!%p157_p3), 112   ;;  %vm624_vm5 = vcmask (!%p157_p3), 261312  }
   0xa   : > { %s958_s18 = smov (!%p157_p3), 104  }
   0xd   : > { %226 = vperm.xlu0 (!%p157_p3), %886, %v212_v5   ;;  %216 = vperm.xlu1 (!%p157_p3), %887, %v210_v6  }
   0xe   : > { %s1205_s12 = smov (!%p186_p4, %s942_s12), 3 }
   0xf   : > { %s815_s24 = sshll.u32 %s1205_s12, 5  ;;  %s816_s19 = sshll.u32 %s1205_s12, 6 }
  0x10   : > { %s193_s4 = scalar_lea.vmem %s1194_s0, %s815_s24  ;;  %s201_s22 = scalar_lea.vmem %s1197_s3, %s816_s19 }
  0x11   : > { %v202_v8 = vld [vmem:[%s193_s4] sm:$0xff]  ;;  %v203_v9 = vld [vmem:[%s193_s4 + $0x8] sm:$0xff]  ;;  %v204_v10 = vld [vmem:[%s193_s4 + $0x10] sm:$0xff] }
  0x12   : > { %v839_v11 = vpack.c.bf16 %v203_v9, %v202_v8  ;;  %v205_v12 = vld [vmem:[%s193_s4 + $0x18] sm:$0xff] }
  0x13   : > { %v845_v13 = vpack.c.bf16 %v205_v12, %v204_v10 }
  0x14   : > { %841 = vmatprep.subr.msk.bf16.mxu0 %vm1025_vm1, %v839_v11  ;;  %851 = vmatprep.subr.msk.bf16.mxu1 %vm1025_vm1, %v839_v11 }
  0x15   : > { %844 = vmatpush3.bf16.xpose.msk.msra.mxu0 %vm1025_vm1, %v839_v11  ;;  %853 = vmatpush3.bf16.xpose.msk.msra.mxu1 %vm1025_vm1, %v839_v11 }
  0x16   : > { %847 = vmatprep.subr.msk.bf16.mxu0 %vm1025_vm1, %v845_v13  ;;  %852 = vmatprep.subr.msk.bf16.mxu1 %vm1025_vm1, %v845_v13 }
  0x1d   : > { %850 = vmatpush3.bf16.xpose.msk.msra.mxu0 %vm1025_vm1, %v845_v13  ;;  %854 = vmatpush3.bf16.xpose.msk.msra.mxu1 %vm1025_vm1, %v845_v13 }
  0x24   : > { %834 = vmatmul.mubr.msk.f32.vlgmr.msra.gmra.mrb[0].mxu0 %vm234_vm0, %v207_v14  ;;  %837 = vmatmul.mubr.msk.f32.vlgmr.msra.gmra.mrb[0].mxu1 %vm234_vm0, %v209_v15 }
  0x88   : > { %v232_v16 = vpop.permute.xlu1 %231  ;;  %v222_v17 = vpop.permute.xlu0 %221 }
  0x8c   : > { %v217_v18 = vpop.permute.xlu1 %216  ;;  %v227_v26 = vpop.permute.xlu0 %226 }
  0xf7   : > { %v835_v19 = vpop.f32.mrb[0].mxu0  ;;  %v838_v20 = vpop.f32.mrb[0].mxu1 }
  0xf8   : > { %v331_v21 = vadd.f32 %v835_v19, %v222_v17  ;;  %v325_v22 = vpop.f32.mrb[1].mxu0  ;;  %v335_v23 = vpop.f32.mrb[1].mxu1  ;;  %v1059_v28 = vadd.f32 %v838_v20, %v232_v16 }
  0xf9   : > { %v1053_v24 = vadd.f32 %v325_v22, %v217_v18  ;;  %v1057_v27 = vadd.f32 %v335_v23, %v227_v26 }
  0xfa   : > { %533 = vrot.lane.b32.xlu1 %v331_v21, %s953_s9  ;;  %446 = vrot.lane.b32.xlu0 %v331_v21, %s954_s10 }
  0xfb   : > { %v344_v25 = vmul.f32 %v331_v21, %v1053_v24 }
  0xfd   : > { %v552_v29 = vsel %vm537_vm2, %v344_v25, 0.0  ;;  %v458_v30 = vsel %vm450_vm3, %v344_v25, 0.0  ;;  %v346_v31 = vsel %vm345_vm4, %v344_v25, 0.0  ;;  %v646_v35 = vsel %vm624_vm5, %v344_v25, 0.0 }
  0xfe   : > { %354 = vrot.lane.b32.xlu1 %v331_v21, %s955_s11  ;;  %620 = vrot.lane.b32.xlu0 %v331_v21, %s956_s16  ;;  %v553_v32 = vrot.slane %v552_v29, 4  ;;  %v459_v33 = vrot.slane %v458_v30, 4  ;;  %v347_v34 = vrot.slane %v346_v31, 4  ;;  %v647_v38 = vrot.slane %v646_v35, 4 }
 0x100   : > { %v554_v36 = vadd.f32 %v553_v32, %v552_v29  ;;  %v460_v37 = vadd.f32 %v459_v33, %v458_v30  ;;  %v348_v39 = vadd.f32 %v347_v34, %v346_v31  ;;  %v1085_v42 = vadd.f32 %v647_v38, %v646_v35 }
 0x102   : > { %499 = vrot.lane.b32.xlu1 %v1057_v27, %s954_s10  ;;  %365 = vrot.lane.b32.xlu0 %v331_v21, %s957_s17  ;;  %v555_v40 = vrot.slane %v554_v36, 2  ;;  %v461_v41 = vrot.slane %v460_v37, 2  ;;  %v349_v43 = vrot.slane %v348_v39, 2  ;;  %v649_v50 = vrot.slane %v1085_v42, 2 }
 0x104   : > { %v556_v45 = vadd.f32 %v555_v40, %v554_v36  ;;  %v462_v49 = vadd.f32 %v461_v41, %v460_v37  ;;  %v350_v51 = vadd.f32 %v349_v43, %v348_v39 }
 0x106   : > { %586 = vrot.lane.b32.xlu1 %v1057_v27, %s953_s9  ;;  %501 = vrot.lane.b32.xlu0 %v1059_v28, %s954_s10  ;;  %v557_v57 = vrot.slane %v556_v45, 1  ;;  %v463_v62 = vrot.slane %v462_v49, 1  ;;  %v351_v4 = vrot.slane %v350_v51, 1 }
 0x108   : > { %v1099_v11 = vadd.f32 %v557_v57, %v556_v45 }
 0x10a   : > { %673 = vrot.lane.b32.xlu1 %v1057_v27, %s956_s16  ;;  %588 = vrot.lane.b32.xlu0 %v1059_v28, %s953_s9 }
 0x10e   : > { %412 = vrot.lane.b32.xlu1 %v1057_v27, %s955_s11  ;;  %675 = vrot.lane.b32.xlu0 %v1059_v28, %s956_s16 }
 0x112   : > { %423 = vrot.lane.b32.xlu1 %v1057_v27, %s957_s17  ;;  %414 = vrot.lane.b32.xlu0 %v1059_v28, %s955_s11 }
 0x116   : > { %376 = vrot.lane.b32.xlu1 %v331_v21, %s958_s18  ;;  %425 = vrot.lane.b32.xlu0 %v1059_v28, %s957_s17  ;;  %v1103_v21 = vadd.f32 %v463_v62, %v462_v49 }
 0x11a   : > { %434 = vrot.lane.b32.xlu0 %v1057_v27, %s958_s18  ;;  %436 = vrot.lane.b32.xlu1 %v1059_v28, %s958_s18 }
 0x16c   : > { %v534_v44 = vpop.permute.xlu1 %533  ;;  %v447_v46 = vpop.permute.xlu0 %446 }
 0x16d   : > { %v536_v47 = vmul.f32 %v534_v44, %v1053_v24  ;;  %v449_v48 = vmul.f32 %v447_v46, %v1053_v24  ;;  %v1110_v44 = vadd.f32 %v351_v4, %v350_v51 }
 0x16f   : > { %v538_v52 = vsel %vm537_vm2, %v536_v47, 0.0  ;;  %v632_v53 = vsel %vm624_vm5, %v536_v47, 0.0  ;;  %v451_v54 = vsel %vm450_vm3, %v449_v48, 0.0  ;;  %v545_v55 = vsel %vm537_vm2, %v449_v48, 0.0 }
 0x170   : > { %v539_v56 = vrot.slane %v538_v52, 4  ;;  %v452_v58 = vrot.slane %v451_v54, 4  ;;  %v546_v59 = vrot.slane %v545_v55, 4  ;;  %v355_v60 = vpop.permute.xlu1 %354  ;;  %v633_v61 = vrot.slane %v632_v53, 4  ;;  %v621_v9 = vpop.permute.xlu0 %620 }
 0x171   : > { %v639_v63 = vsel %vm624_vm5, %v449_v48, 0.0  ;;  %v357_v0 = vmul.f32 %v355_v60, %v1053_v24  ;;  %v623_v33 = vmul.f32 %v621_v9, %v1053_v24 }
 0x172   : > { %v540_v1 = vadd.f32 %v539_v56, %v538_v52  ;;  %v453_v2 = vadd.f32 %v452_v58, %v451_v54  ;;  %v547_v3 = vadd.f32 %v546_v59, %v545_v55  ;;  %v640_v5 = vrot.slane %v639_v63, 4 }
 0x173   : > { %v358_v6 = vsel %vm345_vm4, %v357_v0, 0.0  ;;  %v465_v7 = vsel %vm450_vm3, %v357_v0, 0.0  ;;  %v559_v8 = vsel %vm537_vm2, %v357_v0, 0.0  ;;  %v634_v15 = vadd.f32 %v633_v61, %v632_v53 }
 0x174   : > { %v541_v10 = vrot.slane %v540_v1, 2  ;;  %v454_v12 = vrot.slane %v453_v2, 2  ;;  %v548_v13 = vrot.slane %v547_v3, 2  ;;  %v1101_v14 = vpop.permute.xlu1 %499  ;;  %v359_v16 = vrot.slane %v358_v6, 4  ;;  %v366_v39 = vpop.permute.xlu0 %365 }
 0x175   : > { %v466_v17 = vrot.slane %v465_v7, 4  ;;  %v560_v18 = vrot.slane %v559_v8, 4  ;;  %v641_v23 = vadd.f32 %v640_v5, %v639_v63  ;;  %v635_v35 = vrot.slane %v634_v15, 2 }
 0x176   : > { %v542_v19 = vadd.f32 %v541_v10, %v540_v1  ;;  %v455_v20 = vadd.f32 %v454_v12, %v453_v2  ;;  %v549_v22 = vadd.f32 %v548_v13, %v547_v3  ;;  %v360_v25 = vadd.f32 %v359_v16, %v358_v6 }
 0x177   : > { %v467_v26 = vadd.f32 %v466_v17, %v465_v7  ;;  %v561_v29 = vadd.f32 %v560_v18, %v559_v8  ;;  %v642_v45 = vrot.slane %v641_v23, 2  ;;  %v625_v53 = vsel %vm624_vm5, %v623_v33, 0.0 }
 0x178   : > { %v543_v30 = vrot.slane %v542_v19, 1  ;;  %v456_v31 = vrot.slane %v455_v20, 1  ;;  %v550_v32 = vrot.slane %v549_v22, 1  ;;  %v1106_v34 = vpop.permute.xlu1 %586  ;;  %v361_v36 = vrot.slane %v360_v25, 2 }
 0x179   : > { %v468_v37 = vrot.slane %v467_v26, 2  ;;  %v562_v38 = vrot.slane %v561_v29, 2  ;;  %v368_v54 = vmul.f32 %v366_v39, %v1053_v24  ;;  %v636_v56 = vadd.f32 %v635_v35, %v634_v15 }
 0x17a   : > { %v544_v40 = vadd.f32 %v543_v30, %v542_v19  ;;  %v1108_v41 = vadd.f32 %v456_v31, %v455_v20  ;;  %v551_v43 = vadd.f32 %v550_v32, %v549_v22  ;;  %v362_v46 = vadd.f32 %v361_v36, %v360_v25 }
 0x17b   : > { %v469_v47 = vadd.f32 %v468_v37, %v467_v26  ;;  %v563_v48 = vadd.f32 %v562_v38, %v561_v29  ;;  %v626_v60 = vrot.slane %v625_v53, 4  ;;  %v369_v61 = vsel %vm345_vm4, %v368_v54, 0.0 }
 0x17c   : > { %v479_v49 = vmax.f32 %v1108_v41, %v1103_v21  ;;  %v566_v52 = vmax.f32 %v544_v40, %v551_v43  ;;  %v1116_v55 = vpop.permute.xlu1 %673  ;;  %v363_v57 = vrot.slane %v362_v46, 1  ;;  %v472_v62 = vsel %vm450_vm3, %v368_v54, 0.0 }
 0x17d   : > { %v470_v58 = vrot.slane %v469_v47, 1  ;;  %v564_v59 = vrot.slane %v563_v48, 1  ;;  %v370_v2 = vrot.slane %v369_v61, 4  ;;  %v643_v3 = vadd.f32 %v642_v45, %v641_v23 }
 0x17e   : > { %v567_v51 = vmax.f32 %v566_v52, %v1099_v11  ;;  %v1121_v63 = vadd.f32 %v363_v57, %v362_v46  ;;  %v627_v4 = vadd.f32 %v626_v60, %v625_v53  ;;  %v473_v5 = vrot.slane %v472_v62, 4 }
 0x17f   : > { %v1123_v0 = vadd.f32 %v470_v58, %v469_v47  ;;  %v565_v1 = vadd.f32 %v564_v59, %v563_v48  ;;  %v371_v8 = vadd.f32 %v370_v2, %v369_v61  ;;  %v637_v12 = vrot.slane %v636_v56, 1 }
 0x180   : > { %v1125_v6 = vpop.permute.xlu1 %412  ;;  %v387_v9 = vmax.f32 %v1110_v44, %v1121_v63  ;;  %v650_v13 = vadd.f32 %v649_v50, %v1085_v42  ;;  %v628_v15 = vrot.slane %v627_v4, 2  ;;  %v474_v16 = vadd.f32 %v473_v5, %v472_v62 }
 0x181   : > { %v568_v7 = vmax.f32 %v567_v51, %v565_v1  ;;  %v480_v10 = vmax.f32 %v479_v49, %v1123_v0  ;;  %v372_v23 = vrot.slane %v371_v8, 2  ;;  %v644_v29 = vrot.slane %v643_v3, 1 }
 0x182   : > { %v629_v22 = vadd.f32 %v628_v15, %v627_v4  ;;  %v475_v25 = vrot.slane %v474_v16, 2  ;;  %v638_v36 = vadd.f32 %v637_v12, %v636_v56  ;;  %v651_v42 = vrot.slane %v650_v13, 1 }
 0x183   : > { %v569_v17 = vsub.f32 %v544_v40, %v568_v7  ;;  %v575_v18 = vsub.f32 %v1099_v11, %v568_v7  ;;  %v578_v19 = vsub.f32 %v565_v1, %v568_v7  ;;  %v572_v20 = vsub.f32 %v551_v43, %v568_v7 }
 0x184   : > { %v1134_v26 = vpop.permute.xlu1 %423  ;;  %v630_v31 = vrot.slane %v629_v22, 1  ;;  %v373_v33 = vadd.f32 %v372_v23, %v371_v8  ;;  %v476_v35 = vadd.f32 %v475_v25, %v474_v16  ;;  %v645_v40 = vadd.f32 %v644_v29, %v643_v3  ;;  %v1141_v25 = vpop.permute.xlu0 %501 }
 0x185   : > { %v570_v30 = vmul.f32 1.442695, %v569_v17  ;;  %v573_v32 = vmul.f32 1.442695, %v572_v20  ;;  %v576_v50 = vmul.f32 1.442695, %v575_v18  ;;  %v652_v49 = vadd.f32 %v651_v42, %v650_v13 }
 0x186   : > { %v631_v37 = vadd.f32 %v630_v31, %v629_v22  ;;  %v374_v38 = vrot.slane %v373_v33, 1  ;;  %v477_v11 = vrot.slane %v476_v35, 1  ;;  %v579_v43 = vmul.f32 1.442695, %v578_v19 }
 0x187   : > { %888 = vpow2.f32 %v570_v30 }
 0x188   : > { %v377_v39 = vpop.permute.xlu1 %376  ;;  %v653_v46 = vmax.f32 %v631_v37, %v638_v36  ;;  %890 = vpow2.f32 %v573_v32  ;;  %v375_v47 = vadd.f32 %v374_v38, %v373_v33  ;;  %v478_v48 = vadd.f32 %v477_v11, %v476_v35  ;;  %v589_v38 = vpop.permute.xlu0 %588 }
 0x189   : > { %v379_v45 = vmul.f32 %v377_v39, %v1053_v24  ;;  %892 = vpow2.f32 %v576_v50 }
 0x18a   : > { %v654_v53 = vmax.f32 %v653_v46, %v645_v40  ;;  %v388_v54 = vmax.f32 %v387_v9, %v375_v47  ;;  %v481_v56 = vmax.f32 %v480_v10, %v478_v48  ;;  %894 = vpow2.f32 %v579_v43 }
 0x18b   : > { %v380_v52 = vsel %vm345_vm4, %v379_v45, 0.0 }
 0x18c   : > { %v381_v57 = vrot.slane %v380_v52, 4  ;;  %v655_v58 = vmax.f32 %v654_v53, %v652_v49  ;;  %v485_v59 = vsub.f32 %v1103_v21, %v481_v56  ;;  %v488_v51 = vsub.f32 %v1123_v0, %v481_v56 }
 0x18d   : > { %v491_v60 = vsub.f32 %v478_v48, %v481_v56  ;;  %v482_v24 = vsub.f32 %v1108_v41, %v481_v56  ;;  %v676_v56 = vpop.permute.xlu0 %675 }
 0x18e   : > { %v382_v61 = vadd.f32 %v381_v57, %v380_v52  ;;  %v656_v62 = vsub.f32 %v631_v37, %v655_v58  ;;  %v659_v1 = vsub.f32 %v638_v36, %v655_v58  ;;  %v665_v2 = vsub.f32 %v652_v49, %v655_v58 }
 0x18f   : > { %v662_v3 = vsub.f32 %v645_v40, %v655_v58  ;;  %v486_v12 = vmul.f32 1.442695, %v485_v59  ;;  %v483_v16 = vmul.f32 1.442695, %v482_v24  ;;  %v489_v19 = vmul.f32 1.442695, %v488_v51 }
 0x190   : > { %v657_v5 = vmul.f32 1.442695, %v656_v62  ;;  %v660_v7 = vmul.f32 1.442695, %v659_v1  ;;  %v383_v9 = vrot.slane %v382_v61, 2 }
 0x191   : > { %v889_v4 = vpop.eup %888  ;;  %v663_v8 = vmul.f32 1.442695, %v662_v3  ;;  %v666_v21 = vmul.f32 1.442695, %v665_v2  ;;  %v492_v23 = vmul.f32 1.442695, %v491_v60 }
 0x192   : > { %v891_v10 = vpop.eup %890  ;;  %896 = vpow2.f32 %v657_v5  ;;  %v384_v15 = vadd.f32 %v383_v9, %v382_v61 }
 0x193   : > { %v893_v13 = vpop.eup %892  ;;  %898 = vpow2.f32 %v660_v7  ;;  %v581_v0 = vadd.f32 %v891_v10, %v889_v4 }
 0x194   : > { %v895_v41 = vpop.eup %894  ;;  %900 = vpow2.f32 %v663_v8  ;;  %v385_v18 = vrot.slane %v384_v15, 1 }
 0x195   : > { %v582_v17 = vadd.f32 %v893_v13, %v581_v0  ;;  %902 = vpow2.f32 %v486_v12 }
 0x196   : > { %904 = vpow2.f32 %v666_v21  ;;  %v386_v22 = vadd.f32 %v385_v18, %v384_v15 }
 0x197   : > { %v583_v20 = vadd.f32 %v895_v41, %v582_v17  ;;  %906 = vpow2.f32 %v483_v16 }
 0x198   : > { %v389_v29 = vmax.f32 %v388_v54, %v386_v22 }
 0x199   : > { %908 = vrcp.f32 %v583_v20 }
 0x19a   : > { %910 = vpow2.f32 %v489_v19  ;;  %v390_v30 = vsub.f32 %v1110_v44, %v389_v29  ;;  %v393_v31 = vsub.f32 %v1121_v63, %v389_v29  ;;  %v399_v32 = vsub.f32 %v386_v22, %v389_v29 }
 0x19b   : > { %v396_v33 = vsub.f32 %v375_v47, %v389_v29  ;;  %912 = vpow2.f32 %v492_v23 }
 0x19c   : > { %v897_v35 = vpop.eup %896  ;;  %v391_v42 = vmul.f32 1.442695, %v390_v30  ;;  %v394_v50 = vmul.f32 1.442695, %v393_v31  ;;  %v400_v40 = vmul.f32 1.442695, %v399_v32 }
 0x19d   : > { %v899_v36 = vpop.eup %898  ;;  %v397_v11 = vmul.f32 1.442695, %v396_v33 }
 0x19e   : > { %v668_v37 = vadd.f32 %v899_v36, %v897_v35  ;;  %v901_v39 = vpop.eup %900  ;;  %914 = vpow2.f32 %v391_v42 }
 0x19f   : > { %v903_v43 = vpop.eup %902  ;;  %916 = vpow2.f32 %v394_v50 }
 0x1a0   : > { %v669_v45 = vadd.f32 %v901_v39, %v668_v37  ;;  %v905_v46 = vpop.eup %904  ;;  %918 = vpow2.f32 %v397_v11 }
 0x1a1   : > { %v907_v44 = vpop.eup %906  ;;  %920 = vpow2.f32 %v400_v40 }
 0x1a2   : > { %v670_v48 = vadd.f32 %v905_v46, %v669_v45  ;;  %v494_v47 = vadd.f32 %v907_v44, %v903_v43 }
 0x1a3   : > { %v909_v63 = vpop.eup %908 }
 0x1a4   : > { %v911_v49 = vpop.eup %910  ;;  %v594_v52 = vmul.f32 %v909_v63, %v891_v10  ;;  %922 = vrcp.f32 %v670_v48  ;;  %v585_v53 = vmul.f32 %v909_v63, %v889_v4  ;;  %v599_v54 = vmul.f32 %v909_v63, %v893_v13  ;;  %v415_v10 = vpop.permute.xlu0 %414 }
 0x1a5   : > { %v495_v57 = vadd.f32 %v911_v49, %v494_v47  ;;  %v604_v58 = vmul.f32 %v909_v63, %v895_v41  ;;  %v913_v59 = vpop.eup %912 }
 0x1a6   : > { %v595_v51 = vmul.f32 %v594_v52, %v1101_v14  ;;  %v592_v60 = vmul.f32 %v1106_v34, %v585_v53  ;;  %v596_v24 = vmul.f32 %v594_v52, %v1141_v25  ;;  %v593_v62 = vmul.f32 %v589_v38, %v585_v53 }
 0x1a7   : > { %v496_v61 = vadd.f32 %v913_v59, %v495_v57  ;;  %v600_v2 = vmul.f32 %v599_v54, %v1057_v27  ;;  %v601_v4 = vmul.f32 %v599_v54, %v1059_v28  ;;  %v605_v9 = vmul.f32 %v604_v58, %v1125_v6 }
 0x1a8   : > { %v597_v1 = vadd.f32 %v595_v51, %v592_v60  ;;  %v915_v3 = vpop.eup %914  ;;  %v598_v5 = vadd.f32 %v596_v24, %v593_v62  ;;  %v606_v13 = vmul.f32 %v604_v58, %v415_v10 }
 0x1a9   : > { %924 = vrcp.f32 %v496_v61  ;;  %v917_v7 = vpop.eup %916 }
 0x1aa   : > { %v602_v8 = vadd.f32 %v600_v2, %v597_v1  ;;  %v603_v12 = vadd.f32 %v601_v4, %v598_v5  ;;  %v402_v21 = vadd.f32 %v917_v7, %v915_v3  ;;  %v919_v0 = vpop.eup %918 }
 0x1ab   : > { %v921_v16 = vpop.eup %920 }
 0x1ac   : > { %v607_v15 = vadd.f32 %v605_v9, %v602_v8  ;;  %v403_v41 = vadd.f32 %v919_v0, %v402_v21  ;;  %v608_v17 = vadd.f32 %v606_v13, %v603_v12 }
 0x1ae   : > { %v923_v18 = vpop.eup %922  ;;  %v404_v23 = vadd.f32 %v921_v16, %v403_v41 }
 0x1af   : > { %v686_v19 = vmul.f32 %v923_v18, %v901_v39  ;;  %v681_v20 = vmul.f32 %v923_v18, %v899_v36  ;;  %v672_v22 = vmul.f32 %v923_v18, %v897_v35  ;;  %v691_v29 = vmul.f32 %v923_v18, %v905_v46 }
 0x1b0   : > { %926 = vrcp.f32 %v404_v23 }
 0x1b1   : > { %v687_v30 = vmul.f32 %v686_v19, %v1101_v14  ;;  %v682_v31 = vmul.f32 %v681_v20, %v1106_v34  ;;  %v679_v32 = vmul.f32 %v1116_v55, %v672_v22  ;;  %v683_v33 = vmul.f32 %v681_v20, %v589_v38 }
 0x1b2   : > { %v680_v42 = vmul.f32 %v676_v56, %v672_v22  ;;  %v688_v36 = vmul.f32 %v686_v19, %v1141_v25  ;;  %v692_v46 = vmul.f32 %v691_v29, %v1057_v27  ;;  %v426_v56 = vpop.permute.xlu0 %425 }
 0x1b3   : > { %v925_v50 = vpop.eup %924  ;;  %v684_v37 = vadd.f32 %v682_v31, %v679_v32 }
 0x1b4   : > { %v498_v11 = vmul.f32 %v925_v50, %v907_v44  ;;  %v507_v40 = vmul.f32 %v925_v50, %v903_v43  ;;  %v512_v45 = vmul.f32 %v925_v50, %v911_v49  ;;  %v685_v48 = vadd.f32 %v683_v33, %v680_v42 }
 0x1b5   : > { %v689_v35 = vadd.f32 %v687_v30, %v684_v37  ;;  %v517_v39 = vmul.f32 %v925_v50, %v913_v59  ;;  %v693_v43 = vmul.f32 %v691_v29, %v1059_v28 }
 0x1b6   : > { %v505_v63 = vmul.f32 %v1101_v14, %v498_v11  ;;  %v506_v34 = vmul.f32 %v1141_v25, %v498_v11  ;;  %v509_v55 = vmul.f32 %v507_v40, %v1059_v28  ;;  %v508_v38 = vmul.f32 %v507_v40, %v1057_v27 }
 0x1b7   : > { %v513_v47 = vmul.f32 %v512_v45, %v1125_v6  ;;  %v690_v44 = vadd.f32 %v688_v36, %v685_v48  ;;  %v514_v53 = vmul.f32 %v512_v45, %v415_v10  ;;  %v694_v54 = vadd.f32 %v692_v46, %v689_v35 }
 0x1b8   : > { %v511_v49 = vadd.f32 %v509_v55, %v506_v34  ;;  %v510_v52 = vadd.f32 %v508_v38, %v505_v63  ;;  %v518_v14 = vmul.f32 %v517_v39, %v1134_v26  ;;  %v519_v59 = vmul.f32 %v517_v39, %v426_v56 }
 0x1b9   : > { %v695_v57 = vadd.f32 %v693_v43, %v690_v44 }
 0x1ba   : > { %v515_v58 = vadd.f32 %v513_v47, %v510_v52  ;;  %v516_v25 = vadd.f32 %v514_v53, %v511_v49  ;;  %v927_v51 = vpop.eup %926 }
 0x1bb   : > { %v406_v61 = vmul.f32 %v927_v51, %v915_v3  ;;  %v409_v62 = vmul.f32 %v927_v51, %v917_v7  ;;  %v422_v1 = vmul.f32 %v927_v51, %v919_v0  ;;  %v433_v2 = vmul.f32 %v927_v51, %v921_v16  ;;  %v437_v7 = vpop.permute.xlu1 %436  ;;  %v435_v16 = vpop.permute.xlu0 %434 }
 0x1bc   : > { %v520_v60 = vadd.f32 %v518_v14, %v515_v58  ;;  %v521_v24 = vadd.f32 %v519_v59, %v516_v25 }
 0x1bd   : > { %v408_v5 = vmul.f32 %v406_v61, %v1059_v28  ;;  %v419_v4 = vmul.f32 %v415_v10, %v409_v62  ;;  %v407_v8 = vmul.f32 %v406_v61, %v1057_v27  ;;  %v418_v9 = vmul.f32 %v1125_v6, %v409_v62 }
 0x1be   : > { %526 = vrot.lane.b32.xlu1 %v521_v24, %s955_s11  ;;  %524 = vrot.lane.b32.xlu0 %v520_v60, %s955_s11  ;;  %v430_v13 = vmul.f32 %v426_v56, %v422_v1  ;;  %v429_v21 = vmul.f32 %v1134_v26, %v422_v1  ;;  %v441_v41 = vmul.f32 %v437_v7, %v433_v2 }
 0x1bf   : > { %v421_v12 = vadd.f32 %v419_v4, %v408_v5  ;;  %v420_v3 = vadd.f32 %v418_v9, %v407_v8  ;;  %v440_v28 = vmul.f32 %v435_v16, %v433_v2 }
 0x1c1   : > { %v432_v0 = vadd.f32 %v430_v13, %v421_v12  ;;  %v431_v27 = vadd.f32 %v429_v21, %v420_v3 }
 0x1c2   : > { %613 = vrot.lane.b32.xlu1 %v608_v17, %s957_s17  ;;  %611 = vrot.lane.b32.xlu0 %v607_v15, %s957_s17 }
 0x1c3   : > { %v443_v6 = vadd.f32 %v441_v41, %v432_v0  ;;  %v442_v10 = vadd.f32 %v440_v28, %v431_v27 }
 0x1c5   : > { %445 = vst.msk [vmem:[%s201_s22 + $0x8] sm:$0xff] %vm345_vm4, %v443_v6  ;;  %444 = vst.msk [vmem:[%s201_s22] sm:$0xff] %vm345_vm4, %v442_v10 }
 0x1c6   : > { %700 = vrot.lane.b32.xlu1 %v695_v57, %s958_s18  ;;  %698 = vrot.lane.b32.xlu0 %v694_v54, %s958_s18 }
 0x230   : > { %v527_v26 = vpop.permute.xlu1 %526  ;;  %v525_v15 = vpop.permute.xlu0 %524 }
 0x231   : > { %808 = vst.msk [vmem:[%s201_s22 + $0x18] sm:$0xff] %vm345_vm4, %v527_v26  ;;  %807 = vst.msk [vmem:[%s201_s22 + $0x10] sm:$0xff] %vm345_vm4, %v525_v15 }
 0x234   : > { %v614_v17 = vpop.permute.xlu1 %613  ;;  %v612_v18 = vpop.permute.xlu0 %611 }
 0x235   : > { %810 = vst.msk [vmem:[%s201_s22 + $0x28] sm:$0xff] %vm345_vm4, %v614_v17  ;;  %809 = vst.msk [vmem:[%s201_s22 + $0x20] sm:$0xff] %vm345_vm4, %v612_v18 }
 0x238   : > { %v701_v19 = vpop.permute.xlu1 %700  ;;  %v699_v20 = vpop.permute.xlu0 %698 }
 0x239   : > { %812 = vst.msk [vmem:[%s201_s22 + $0x38] sm:$0xff] %vm345_vm4, %v701_v19  ;;  %811 = vst.msk [vmem:[%s201_s22 + $0x30] sm:$0xff] %vm345_vm4, %v699_v20 }
 0x23a PF: > { %s13_s14 = sadd.s32 1, %s950_s14   ;;  %s1200_s12 = smov %s946_s13 }
 0x23b   : > { %p10_p5 = scmp.ge.s32.totalorder %s13_s14, 6   ;;  %s1201_s13 = smov %s1203_s15 }
 0x23d   :  { %12 = sbr.rel (!%p10_p5) target bundleno = 2 (0x2), region = 65 }

</bundles_post_ra>
